<compile_context>
chip_gen: v6e
topology: v6e:2x2x1
jax: 0.10.0
libtpu: 0.0.40
codegen_flags: <defaults>
</compile_context>

<pallas_src>
import math

import numpy as np
import jax
import jax.numpy as jnp
from jax.experimental import pallas as pl
from jax.experimental.pallas import tpu as pltpu


# ----------------------------- pallas kernel -----------------------------
def _drop_path_kernel(scale_ref, x_ref, o_ref):
    # scale_ref: (B,) f32 per-sample scales in SMEM (each is 0 or 1/keep_prob).
    # x_ref / o_ref: (1, TR, C) tile in VMEM.
    b = pl.program_id(0)
    s = scale_ref[b].astype(x_ref.dtype)      # do the multiply in the input dtype
    o_ref[...] = x_ref[...] * s


# ----------------------------- wrapper -----------------------------
def drop_path_pallas(x, rand, drop_prob, training, *,
                     target_block_bytes=2 * 1024 * 1024):
    """DropPath forward.  x: (B, ...); rand: (B,) uniform [0,1) draws.

    drop_prob / training are static Python values (as in the PyTorch module).
    """
    if drop_prob == 0.0 or not training:
        return x                               # identity path, same as PyTorch
    keep_prob = 1.0 - float(drop_prob)

    b = x.shape[0]
    n = math.prod(x.shape[1:])
    itemsize = jnp.dtype(x.dtype).itemsize

    # Per-sample scale: floor(keep_prob + U[0,1)) / keep_prob  in {0, 1/keep_prob}.
    # Tiny (B,)-sized computation in the wrapper; lives in SMEM inside the kernel.
    mask = jnp.floor(keep_prob + rand.astype(x.dtype)).astype(jnp.float32)
    scale = mask / jnp.float32(keep_prob)

    # Lane-dense per-sample view + row tiling (~target_block_bytes per block).
    if n % 128 == 0:
        rows, cols = n // 128, 128
        target_rows = max(8, (target_block_bytes // (cols * itemsize)) // 8 * 8)
        tr = rows if rows <= target_rows else target_rows
    else:
        # TODO(synk): trailing-dim product not a multiple of 128 -> single slab
        # per sample with masked (<128-lane) stores; correct but not lane-dense.
        rows, cols = 1, n
        tr = 1
    xv = x.reshape(b, rows, cols)

    out = pl.pallas_call(
        _drop_path_kernel,
        out_shape=jax.ShapeDtypeStruct((b, rows, cols), x.dtype),
        grid=(b, pl.cdiv(rows, tr)),
        in_specs=[
            # tiny per-sample scalars: whole (B,) array in SMEM, no blocking
            pl.BlockSpec(memory_space=pltpu.MemorySpace.SMEM),
            pl.BlockSpec((1, tr, cols), lambda i, r: (i, r, 0)),
        ],
        out_specs=pl.BlockSpec((1, tr, cols), lambda i, r: (i, r, 0)),
        compiler_params=pltpu.CompilerParams(
            dimension_semantics=("parallel", "parallel")),
        cost_estimate=pl.CostEstimate(
            flops=b * n,
            transcendentals=0,
            bytes_accessed=2 * b * n * itemsize + b * 4),
    )(scale, xv)
    return out.reshape(x.shape)


# ------------------- pure-JAX reference (mirrors PyTorch math) -------------------
def drop_path_reference(x, rand, drop_prob, training):
    if drop_prob == 0.0 or not training:
        return x
    keep_prob = 1.0 - drop_prob
    shape = (x.shape[0],) + (1,) * (x.ndim - 1)
    random_tensor = jnp.floor(keep_prob + rand.astype(x.dtype)).reshape(shape)
    return x / keep_prob * random_tensor


# ----------------------------- main -----------------------------
if __name__ == "__main__":
    def run_case(shape, dtype, drop_prob, key, rtol, atol, **kw):
        kx, kr = jax.random.split(key)
        x = jax.random.normal(kx, shape, jnp.float32).astype(dtype)
        rand = jax.random.uniform(kr, (shape[0],), jnp.float32)
        out = jax.block_until_ready(
            drop_path_pallas(x, rand, drop_prob, training=True, **kw))
        ref = drop_path_reference(x, rand, drop_prob, training=True)
        np.testing.assert_allclose(np.asarray(out.astype(jnp.float32)),
                                   np.asarray(ref.astype(jnp.float32)),
                                   rtol=rtol, atol=atol)

    k1, k2, k3, k4, k5 = jax.random.split(jax.random.PRNGKey(0), 5)

    # (B, L, C) transformer activations, f32, lane-dense fast path.
    run_case((2, 64, 128), jnp.float32, 0.25, k1, 1e-6, 1e-6)
    # bf16 activations: the multiply stays in bf16 inside the kernel.
    run_case((2, 197, 768), jnp.bfloat16, 0.25, k2, 2e-2, 2e-2)
    # Force multi-block row tiling (grid=(2,2)) including a masked partial last block.
    run_case((2, 200, 128), jnp.float32, 0.4, k3, 1e-6, 1e-6,
             target_block_bytes=64 * 1024)
    # Trailing-dim product not a multiple of 128 -> fallback slab path.
    run_case((2, 3, 5, 7), jnp.float32, 0.25, k4, 1e-6, 1e-6)

    # Identity paths (eval mode / drop_prob == 0), exact like PyTorch.
    kx, kr = jax.random.split(k5)
    x = jax.random.normal(kx, (2, 64, 128), jnp.float32)
    rand = jax.random.uniform(kr, (2,), jnp.float32)
    out_eval = jax.block_until_ready(drop_path_pallas(x, rand, 0.25, training=False))
    np.testing.assert_array_equal(np.asarray(out_eval), np.asarray(x))
    out_p0 = jax.block_until_ready(drop_path_pallas(x, rand, 0.0, training=True))
    np.testing.assert_array_equal(np.asarray(out_p0), np.asarray(x))

    print("KERNEL_OK")
</pallas_src>

<mosaic_0001>
module attributes {stable_mosaic.version = 11 : i64} {
  func.func @_drop_path_kernel(%arg0: i32, %arg1: i32, %arg2: memref<2xf32, #tpu.memory_space<smem>>, %arg3: memref<1x64x128xf32, #tpu.memory_space<vmem>>, %arg4: memref<1x64x128xf32, #tpu.memory_space<vmem>>) attributes {dimension_semantics = [#tpu.dimension_semantics<parallel>, #tpu.dimension_semantics<parallel>], iteration_bounds = array<i64: 2, 1>, scalar_prefetch = 0 : i64, scratch_operands = 0 : i64, tpu.core_type = #tpu.core_type<tc>, window_params = [{transform_indices = @transform_0, window_bounds = array<i64: 2>}, {transform_indices = @transform_1, window_bounds = array<i64: 1, 64, 128>}, {transform_indices = @transform_2, window_bounds = array<i64: 1, 64, 128>}]} {
    %0 = arith.index_cast %arg0 : i32 to index
    %1 = memref.load %arg2[%0] : memref<2xf32, #tpu.memory_space<smem>>
    %c0 = arith.constant 0 : index
    %c0_0 = arith.constant 0 : index
    %c0_1 = arith.constant 0 : index
    %2 = vector.load %arg3[%c0, %c0_0, %c0_1] : memref<1x64x128xf32, #tpu.memory_space<vmem>>, vector<1x64x128xf32>
    %3 = vector.broadcast %1 : f32 to vector<1x64x128xf32>
    %4 = arith.mulf %2, %3 : vector<1x64x128xf32>
    %c0_2 = arith.constant 0 : index
    %c0_3 = arith.constant 0 : index
    %c0_4 = arith.constant 0 : index
    %5 = vector.load %arg4[%c0_2, %c0_3, %c0_4] : memref<1x64x128xf32, #tpu.memory_space<vmem>>, vector<1x64x128xf32>
    tpu.vector_store %arg4[%c0_2, %c0_3, %c0_4], %4 {strides = array<i32>} : memref<1x64x128xf32, #tpu.memory_space<vmem>>, vector<1x64x128xf32>,
    return
  }
  func.func @transform_0(%arg0: i32, %arg1: i32) -> i32 {
    %c0_i32 = arith.constant 0 : i32
    %c0_i32_0 = arith.constant 0 : i32
    return %c0_i32 : i32
  }
  func.func @transform_1(%arg0: i32, %arg1: i32) -> (i32, i32, i32) {
    %c0_i32 = arith.constant 0 : i32
    %c0_i32_0 = arith.constant 0 : i32
    return %arg0, %arg1, %c0_i32 : i32, i32, i32
  }
  func.func @transform_2(%arg0: i32, %arg1: i32) -> (i32, i32, i32) {
    %c0_i32 = arith.constant 0 : i32
    %c0_i32_0 = arith.constant 0 : i32
    return %arg0, %arg1, %c0_i32 : i32, i32, i32
  }
}

</mosaic_0001>

<bundles_post_ra>
// kernel: tpu_custom_call.1
= control target key start
LH: loop header
LB: loop body
LE: loop exit
PB: predicated region body
PF: predicated region fallthrough
CT: control target
= control target key end

     0   :  { %s742_s0 = inlined_call_operand.hbm [shape: f32[2], index: 0, kind: input, shape index: {}]   ;;  %s743_s1 = inlined_call_operand.hbm [shape: f32[2,64,128], index: 1, kind: input, shape index: {}]   ;;  %s744_s2 = inlined_call_operand.hbm [shape: f32[2,64,128], index: 2, kind: output, shape index: {}]  }
   0x1   :  { %745 = sst [smem:[#allocation11_spill]] %s742_s0 }
   0x2   :  { %7 = vsyncpa [#allocation5], 0 }
   0x3   :  { %8 = vsyncpa [#allocation3], 0 }
   0x4   :  { %10 = vsyncpa [#allocation3 + $0x1], 0 }
   0x5   :  { %11 = vsyncpa [#allocation4], 0 }
   0x6   :  { %13 = vsyncpa [#allocation4 + $0x1], 0  ;;  %s578_s9 = smov 0   ;;  %s580_s10 = smov 0  }
   0x7   :  { %s582_s11 = smov 0   ;;  %s584_s12 = smov 0  }
   0x8   :  { %s586_s13 = smov 0   ;;  %s588_s14 = smov 0  }
   0x9 LB: > { %s335_s15 = sadd.s32 4294967295, %s554_s14   ;;  %s336_s16 = sadd.s32 4294967294, %s554_s14   ;;  %s554_s14 = sphi %s588_s14, %s19_s14   ;;  %s550_s13 = sphi %s586_s13, %s759_s13   ;;  %s546_s12 = sphi %s584_s12, %s758_s12   ;;  %s542_s11 = sphi %s582_s11, %s757_s11   ;;  %s538_s10 = sphi %s580_s10, %s756_s10   ;;  %s534_s9 = sphi %s578_s9, %s755_s9  }
   0xa   : > { %s61_s17 = sadd.s32 1, %s542_s11  ;;  %p68_p0 = scmp.ne.s32.totalorder %s542_s11, %s538_s10 }
   0xb   : > { %p69_p1 = scmp.eq.s32.totalorder %s554_s14, 0  ;;  %p74_p2 = scmp.ne.s32.totalorder %s538_s10, %s534_s9 }
   0xc   : > { %p616_p3 = scmp.eq.s32.totalorder %s335_s15, 0  ;;  %p100_p4 = scmp.eq.s32.totalorder %s335_s15, 1 }
   0xd   : > { %p70_p5 = por %p69_p1, %p68_p0  ;;  %p106_p6 = scmp.eq.s32.totalorder %s336_s16, 1 }
   0xe   : > { %p622_p7 = por %p616_p3, %p74_p2  ;;  %p626_p8 = por %p100_p4, %p68_p0 }
   0xf   : > { %p630_p9 = por %p106_p6, %p74_p2  ;;  %p337_p10 = scmp.ge.s32.totalorder %s554_s14, 1 }
  0x10   : > { %p113_p11 = scmp.lt.s32.totalorder %s554_s14, 3  ;;  %p375_p1 = scmp.lt.s32.totalorder %s554_s14, 2 }
  0x11   : > { %s749_s21 = scalar_select %p630_p9, 1, 0 }
  0x12   : > { %p637_p13 = pnand %p337_p10, %p113_p11  ;;  %s135_s23 = sand.u32 1, %s542_s11  }
  0x13   : > { %p645_p2 = pnand %p375_p1, %p70_p5  ;;  %s31_s25 = sadd.s32 1, %s550_s13 }
  0x14   : > { %p362_p0 = pneg %p637_p13  ;;  %s340_s26 = sshll.u32 %s135_s23, 6 }
  0x15   : > { %p33_p6 = scmp.ge.s32.totalorder %s31_s25, 2  ;;  %s556_s27 = smov [#allocation2]  }
  0x16   : > { %p363_p4 = pnand %p362_p0, %p616_p3  ;;  %s752_s0 = sld [smem:[#allocation11_spill]] }
  0x17   : > { %s761_s25 = smov (%p33_p6, %s31_s25), 0  ;;  %s352_s30 = sshll.u32 %s550_s13, 10 }
  0x18   : > { %s56_s3 = ssub.s32 %s550_s13, %s761_s25  ;;  %s147_s6 = scalar_lea.hbm %s743_s1, %s352_s30 }
  0x19   : > { %p59_p5 = scmp.eq.s32.totalorder %s56_s3, 0  ;;  %s139_s7 = scalar_lea.vmem [#allocation6], %s340_s26 }
  0x1a   : > { %s148_s8 = sshll.u32 %s139_s7, 4  ;;  %s136_s16 = scalar_lea.sflag [#allocation3], %s135_s23  ;;  %s149_s8 = int_to_ptr.vmem [resolvable:$true] %s148_s8 }
  0x1b   : > { %s666_s15 = scalar_select %p59_p5, %s542_s11, %s61_s17  }
  0x1c   : > { %365 = dma.hbm_to_smem (!%p363_p4), %s752_s0, 16, %s556_s27, [#allocation5]  }
  0x1d   : > { %p444_p10 = pneg %p645_p2  ;;  %s455_s27 = scalar_lea.vmem %s149_s8, 1024 }
  0x1e   : > { %p456_p11 = scmp.ne.s32.totalorder %s149_s8, %s455_s27  ;;  %s557_s28 = smov [#allocation6]  }
  0x1f   : > { %s460_s29 = sshll.u32 %s557_s28, 4  ;;  %s461_s29 = int_to_ptr.vmem [resolvable:$false] %s460_s29 }
  0x20   : > { %p458_p1 = pnand %p456_p11, %p444_p10  ;;  %s462_s0 = scalar_lea.vmem %s461_s29, 2048 }
  0x21   : > { %p463_p4 = scmp.lt.s32.totalorder %s149_s8, %s461_s29  ;;  %p464_p6 = scmp.lt.s32.totalorder %s462_s0, %s455_s27 }
  0x22   : > { %p459_p0 = pneg %p458_p1 }
  0x23   : > { %p465_p12 = por %p464_p6, %p463_p4 }
  0x25   : > { %p466_p9 = pnand %p465_p12, %p459_p0 }
  0x27   : > { %469 = shalt.err (!%p466_p9)
}
  0x28   : > { %s558_s26 = smov 128   ;;  %s559_s17 = smov 8  }
  0x29   : > { %369 = dma.hbm_to_vmem [thread:$0]  (!%p645_p2), %s147_s6, 1024, %s149_s8, %s136_s16, %s558_s26, %s558_s26, %s559_s17  }
  0x2a   : > { %160 = sbr.rel (%p637_p13) target bundleno = 80 (0x50), region = 28 }
  0x2f   : > { %521 = dma.done.wait (%p616_p3), [#allocation5], 16  }
  0x30   : > { %523 = vsyncadd (%p616_p3), [#allocation5], 4294967280  ;;  %s679_s0 = sand.u32 1, %s538_s10  }
  0x31   : > { %s345_s23 = sshll.u32 %s679_s0, 6  ;;  %s167_s30 = scalar_lea.sflag [#allocation3], %s679_s0 }
  0x32   : > { %s170_s3 = scalar_lea.vmem [#allocation6], %s345_s23 }
  0x33   : > { %525 = dma.done.wait (%p622_p7), %s167_s30, 1024  }
  0x34   : > { %527 = vsyncadd (%p622_p7), %s167_s30, 4294966272 }
  0x35   : > { %175 = sfence }
  0x36   : > { %s194_s22 = sld [smem:[#allocation2 + %s546_s12]]  ;;  %v195_v0 = vld [vmem:[%s170_s3] sm:$0xff]  ;;  %v196_v1 = vld [vmem:[%s170_s3 + $0x8] sm:$0xff]  ;;  %s191_s18 = scalar_lea.vmem [#allocation7], %s345_s23  ;;  %v197_v2 = vld [vmem:[%s170_s3 + $0x10] sm:$0xff] }
  0x37   : > { %s236_s24 = sshll.u32 %s191_s18, 4  ;;  %v198_v3 = vld [vmem:[%s170_s3 + $0x18] sm:$0xff]  ;;  %v199_v4 = vld [vmem:[%s170_s3 + $0x20] sm:$0xff]  ;;  %s353_s4 = sshll.u32 %s546_s12, 10  ;;  %v200_v5 = vld [vmem:[%s170_s3 + $0x28] sm:$0xff]  ;;  %s689_s24 = int_to_ptr.vmem [resolvable:$true] %s236_s24 }
  0x38   : > { %v201_v6 = vld [vmem:[%s170_s3 + $0x30] sm:$0xff]  ;;  %v202_v7 = vld [vmem:[%s170_s3 + $0x38] sm:$0xff]  ;;  %s694_s6 = scalar_lea.hbm %s744_s2, %s353_s4  ;;  %s221_s12 = scalar_lea.sflag [#allocation4], %s679_s0 }
  0x39   : > { %s470_s7 = scalar_lea.vmem %s689_s24, 1024  ;;  %s560_s8 = smov [#allocation7]  }
  0x3a   : > { %p471_p3 = scmp.ne.s32.totalorder %s689_s24, %s470_s7  ;;  %s474_s16 = sshll.u32 %s560_s8, 4  ;;  %s475_s16 = int_to_ptr.vmem [resolvable:$false] %s474_s16 }
  0x3b   : > { %s476_s27 = scalar_lea.vmem %s475_s16, 2048  ;;  %p477_p12 = scmp.lt.s32.totalorder %s689_s24, %s475_s16 }
  0x3c   : > { %v203_v8 = vstv %s194_s22  ;;  %p472_p7 = pnand %p471_p3, %p626_p8  ;;  %p478_p13 = scmp.lt.s32.totalorder %s476_s27, %s470_s7 }
  0x3d   : > { %v204_v9 = vmul.f32 %v203_v8, %v195_v0  ;;  %v205_v10 = vmul.f32 %v203_v8, %v196_v1  ;;  %v206_v11 = vmul.f32 %v203_v8, %v197_v2  ;;  %v207_v12 = vmul.f32 %v203_v8, %v198_v3 }
  0x3e   : > { %v208_v13 = vmul.f32 %v203_v8, %v199_v4  ;;  %v209_v14 = vmul.f32 %v203_v8, %v200_v5  ;;  %v210_v15 = vmul.f32 %v203_v8, %v201_v6  ;;  %v211_v16 = vmul.f32 %v203_v8, %v202_v7  ;;  %p473_p9 = pneg %p472_p7  ;;  %p479_p2 = por %p478_p13, %p477_p12 }
  0x3f   : > { %212 = vst [vmem:[%s191_s18] sm:$0xff] %v204_v9  ;;  %213 = vst [vmem:[%s191_s18 + $0x8] sm:$0xff] %v205_v10 }
  0x40   : > { %214 = vst [vmem:[%s191_s18 + $0x10] sm:$0xff] %v206_v11  ;;  %215 = vst [vmem:[%s191_s18 + $0x18] sm:$0xff] %v207_v12  ;;  %p480_p5 = pnand %p479_p2, %p473_p9 }
  0x41   : > { %216 = vst [vmem:[%s191_s18 + $0x20] sm:$0xff] %v208_v13  ;;  %217 = vst [vmem:[%s191_s18 + $0x28] sm:$0xff] %v209_v14 }
  0x42   : > { %218 = vst [vmem:[%s191_s18 + $0x30] sm:$0xff] %v210_v15  ;;  %219 = vst [vmem:[%s191_s18 + $0x38] sm:$0xff] %v211_v16 }
  0x43   : > { %483 = shalt.err (!%p480_p5)
}
  0x44   : > { %s484_s28 = scalar_lea.hbm %s694_s6, 1024  ;;  %s488_s17 = scalar_lea.hbm %s744_s2, 2048 }
  0x45   : > { %p485_p10 = scmp.ne.s32.totalorder %s694_s6, %s484_s28  ;;  %p489_p0 = scmp.lt.s32.totalorder %s694_s6, %s744_s2 }
  0x46   : > { %p490_p4 = scmp.lt.s32.totalorder %s488_s17, %s484_s28 }
  0x47   : > { %p486_p11 = pnand %p485_p10, %p626_p8 }
  0x48   : > { %p491_p6 = por %p490_p4, %p489_p0 }
  0x49   : > { %p487_p1 = pneg %p486_p11 }
  0x4b   : > { %p492_p3 = pnand %p491_p6, %p487_p1 }
  0x4d   : > { %495 = shalt.err (!%p492_p3)
}
  0x4e   : > { %s561_s3 = smov 128   ;;  %s562_s22 = smov 8  }
  0x4f   : > { %360 = dma.vmem_to_hbm [thread:$0]  (%p626_p8), %s689_s24, 1024, %s694_s6, %s221_s12, %s561_s3, %s561_s3, %s562_s22  }
  0x50 PF: > { %s251_s18 = sand.u32 1, %s534_s9   ;;  %p753_p7 = scmp.ne.s32.totalorder %s749_s21, 0 }
  0x51   : > { %p754_p9 = scmp.ge.s32.totalorder %s554_s14, 2  ;;  %s252_s4 = scalar_lea.sflag [#allocation4], %s251_s18 }
  0x53   : > { %p371_p12 = pnand %p754_p9, %p753_p7 }
  0x55   : > { %p372_p13 = pneg %p371_p12 }
  0x57   : > { %529 = dma.done.wait (%p372_p13), %s252_s4, 1024  }
  0x58   : > { %531 = vsyncadd (%p372_p13), %s252_s4, 4294966272  ;;  %s19_s14 = sadd.s32 1, %s554_s14   ;;  %s755_s9 = smov %s538_s10 }
  0x59   : > { %p16_p2 = scmp.ge.s32.totalorder %s19_s14, 4   ;;  %s756_s10 = smov %s542_s11 }
  0x5a   : > { %s757_s11 = smov %s666_s15  ;;  %s758_s12 = smov %s550_s13 }
  0x5b   : > { %s759_s13 = smov %s761_s25  ;;  %18 = sbr.rel (!%p16_p2) target bundleno = 9 (0x9), region = 78 }
  0x60   :  { %257 = vsyncpa [#allocation3], 1 }
  0x61   :  { %259 = vsyncpa [#allocation3 + $0x1], 1 }
  0x62   :  { %260 = vsyncpa [#allocation4], 1 }
  0x63   :  { %262 = vsyncpa [#allocation4 + $0x1], 1 }
  0x64   :  { %263 = vsyncpa [#allocation5], 1 }
  0x65   :  { %265 = vsyncpa [#allocation5 + $0x1], 1 }

</bundles_post_ra>
